<compile_context>
chip_gen: v7x
topology: tpu7x:2x2x1
jax: 0.10.0
libtpu: 0.0.40
codegen_flags: <defaults>
</compile_context>

<pallas_src>
import jax
import jax.numpy as jnp
import numpy as np
from jax.experimental import pallas as pl
from jax.experimental.pallas import tpu as pltpu

# ---- problem sizes (small, consistent with the module's forward) -----------
N, C_IN, H, W = 2, 4, 8, 8          # x: (batch, in_channels, height, width)
NUM_TASKS = 3                       # len(tasks) == len(losses) == len(targets)
C_OUT = 8                           # output channels of each 1x1-conv task head
M = N * H * W                       # 128 flattened "pixels" -> lane dimension
TC = NUM_TASKS * C_OUT              # 24 fused output channels -> sublane dim

_INV_COUNT = 1.0 / float(M * C_OUT)   # MSE 'mean' denominator per task

# Advisory cost hint for XLA scheduling around the custom call.
_FLOPS = 2 * C_IN * TC * M + 4 * TC * M            # FMA contraction + epilogue
_BYTES = 4 * (C_IN * M + TC * C_IN + TC + 2 * TC * M + NUM_TASKS + 2)


def multitask_kernel(coef_ref, logsum_ref, x_ref, w_ref, b_ref, tgt_ref,
                     out_ref, loss_ref):
    # --- fused 1x1-conv heads: (TC, M) = (TC, C_IN) . (C_IN, M) -------------
    x = x_ref[...]                       # (C_IN, M)
    w = w_ref[...]                       # (TC, C_IN)
    # K = C_IN = 4 contraction as unrolled VPU broadcast-FMA over dense vregs.
    acc = w[:, 0:1] * x[0:1, :]
    for k in range(1, C_IN):
        acc = acc + w[:, k:k + 1] * x[k:k + 1, :]
    y = acc + b_ref[...]                 # (TC, M) + (TC, 1) lane broadcast
    out_ref[...] = y                     # lane-dense, unmasked stores

    # --- per-task MSE + uncertainty weighting --------------------------------
    # One squared-error pass over the whole tile; each task is exactly C_OUT
    # contiguous rows -> each reduction covers one dense (8, 128) vreg.
    diff = y - tgt_ref[...]
    sq = diff * diff
    total = logsum_ref[0]                # log(prod sigma), precomputed (SMEM)
    for t in range(NUM_TASKS):           # static tiny loop
        sse_t = jnp.sum(sq[t * C_OUT:(t + 1) * C_OUT, :])
        total = total + coef_ref[t] * sse_t   # coef_t = 0.5/(sigma_t^2 * M*C_OUT)
    loss_ref[0, 0] = total


@jax.jit
def multitask_forward(x_nchw, w_fused_t, b_fused, targets_fused_t, sigma):
    # NCHW -> (C_IN, M): single transpose; M index = n*H*W + h*W + w.
    x_t = x_nchw.transpose(1, 0, 2, 3).reshape(C_IN, M)

    # sigma-only terms hoisted out of the kernel (fused into the same jit).
    # TODO(synk): log(sigma) is undefined for sigma <= 0; a training-robust
    # variant should use the log(sigma^2) parameterization.
    coef = (0.5 * _INV_COUNT) / (sigma * sigma)        # (NUM_TASKS,)
    logsum = jnp.log(jnp.prod(sigma)).reshape(1)       # (1,)

    out_t, loss = pl.pallas_call(
        multitask_kernel,
        out_shape=(
            jax.ShapeDtypeStruct((TC, M), jnp.float32),   # fused task outputs
            jax.ShapeDtypeStruct((1, 1), jnp.float32),    # total weighted loss
        ),
        in_specs=[
            pl.BlockSpec(memory_space=pltpu.MemorySpace.SMEM),  # coef   (T,)
            pl.BlockSpec(memory_space=pltpu.MemorySpace.SMEM),  # logsum (1,)
            pl.BlockSpec(memory_space=pltpu.MemorySpace.VMEM),  # x_t  (C_IN, M)
            pl.BlockSpec(memory_space=pltpu.MemorySpace.VMEM),  # w_t  (TC, C_IN)
            pl.BlockSpec(memory_space=pltpu.MemorySpace.VMEM),  # b    (TC, 1)
            pl.BlockSpec(memory_space=pltpu.MemorySpace.VMEM),  # tgt  (TC, M)
        ],
        out_specs=(
            pl.BlockSpec(memory_space=pltpu.MemorySpace.VMEM),
            pl.BlockSpec(memory_space=pltpu.MemorySpace.SMEM),
        ),
        cost_estimate=pl.CostEstimate(
            flops=_FLOPS, transcendentals=0, bytes_accessed=_BYTES),
    )(coef, logsum, x_t, w_fused_t, b_fused, targets_fused_t)

    # (TC, M) -> per-task NCHW with ONE transpose for all tasks.
    out5 = out_t.reshape(NUM_TASKS, C_OUT, N, H, W).transpose(0, 2, 1, 3, 4)
    outputs = [out5[t] for t in range(NUM_TASKS)]
    return outputs, loss[0, 0]


def _reference(x_nchw, w_fused_t, b_fused, targets_nchw, sigma):
    """Pure-JAX reference replicating the PyTorch forward semantics."""
    outs, losses = [], []
    for t in range(NUM_TASKS):
        w_t = w_fused_t[t * C_OUT:(t + 1) * C_OUT, :]     # (C_OUT, C_IN)
        b_t = b_fused[t * C_OUT:(t + 1) * C_OUT, 0]       # (C_OUT,)
        out_t = jnp.einsum('oc,nchw->nohw', w_t, x_nchw) \
            + b_t[None, :, None, None]                    # 1x1 conv, NCHW
        outs.append(out_t)
        losses.append(jnp.mean((out_t - targets_nchw[t]) ** 2))
    losses = jnp.stack(losses)
    total = jnp.sum(0.5 * losses / sigma ** 2) + jnp.log(jnp.prod(sigma))
    return outs, total


if __name__ == "__main__":
    key = jax.random.PRNGKey(0)
    k_x, k_w, k_b, k_t = jax.random.split(key, 4)

    # Shared input, NCHW as in the PyTorch module.
    x = jax.random.normal(k_x, (N, C_IN, H, W), dtype=jnp.float32)

    # NUM_TASKS 1x1-conv heads fused into one (TC, C_IN) weight + (TC, 1) bias.
    w_fused_t = 0.1 * jax.random.normal(k_w, (TC, C_IN), dtype=jnp.float32)
    b_fused = 0.1 * jax.random.normal(k_b, (TC, 1), dtype=jnp.float32)

    # Per-task targets, each (N, C_OUT, H, W) NCHW; fused to (TC, M) with the
    # pixel axis in lanes (matches the kernel's output layout).
    targets_nchw = jax.random.normal(
        k_t, (NUM_TASKS, N, C_OUT, H, W), dtype=jnp.float32)
    targets_fused_t = targets_nchw.transpose(0, 2, 1, 3, 4).reshape(TC, M)

    # self.sigma = nn.Parameter(torch.ones(len(tasks)))  (weights=None path)
    sigma = jnp.ones((NUM_TASKS,), dtype=jnp.float32)

    outputs, loss = multitask_forward(x, w_fused_t, b_fused,
                                      targets_fused_t, sigma)
    outputs = [jax.block_until_ready(o) for o in outputs]
    loss = jax.block_until_ready(loss)

    ref_outputs, ref_loss = _reference(x, w_fused_t, b_fused,
                                       targets_nchw, sigma)
    for o, ro in zip(outputs, ref_outputs):
        np.testing.assert_allclose(np.asarray(o), np.asarray(ro),
                                   rtol=1e-4, atol=1e-4)
    np.testing.assert_allclose(np.asarray(loss), np.asarray(ref_loss),
                               rtol=1e-4, atol=1e-4)

    print("KERNEL_OK")
</pallas_src>

<mosaic_0001>
module attributes {stable_mosaic.version = 11 : i64} {
  func.func @multitask_kernel(%arg0: memref<3xf32, #tpu.memory_space<smem>>, %arg1: memref<1xf32, #tpu.memory_space<smem>>, %arg2: memref<4x128xf32, #tpu.memory_space<vmem>>, %arg3: memref<24x4xf32, #tpu.memory_space<vmem>>, %arg4: memref<24x1xf32, #tpu.memory_space<vmem>>, %arg5: memref<24x128xf32, #tpu.memory_space<vmem>>, %arg6: memref<24x128xf32, #tpu.memory_space<vmem>>, %arg7: memref<1x1xf32, #tpu.memory_space<smem>>) attributes {dimension_semantics = [], scalar_prefetch = 0 : i64, scratch_operands = 0 : i64, tpu.core_type = #tpu.core_type<tc>} {
    %c0 = arith.constant 0 : index
    %c0_0 = arith.constant 0 : index
    %0 = vector.load %arg2[%c0, %c0_0] : memref<4x128xf32, #tpu.memory_space<vmem>>, vector<4x128xf32>
    %c0_1 = arith.constant 0 : index
    %c0_2 = arith.constant 0 : index
    %1 = vector.load %arg3[%c0_1, %c0_2] : memref<24x4xf32, #tpu.memory_space<vmem>>, vector<24x4xf32>
    %2 = vector.extract_strided_slice %1 {offsets = [0, 0], sizes = [24, 1], strides = [1, 1]} : vector<24x4xf32> to vector<24x1xf32>
    %3 = vector.extract_strided_slice %0 {offsets = [0, 0], sizes = [1, 128], strides = [1, 1]} : vector<4x128xf32> to vector<1x128xf32>
    %4 = vector.broadcast %2 : vector<24x1xf32> to vector<24x128xf32>
    %5 = vector.broadcast %3 : vector<1x128xf32> to vector<24x128xf32>
    %6 = arith.mulf %4, %5 : vector<24x128xf32>
    %7 = vector.extract_strided_slice %1 {offsets = [0, 1], sizes = [24, 1], strides = [1, 1]} : vector<24x4xf32> to vector<24x1xf32>
    %8 = vector.extract_strided_slice %0 {offsets = [1, 0], sizes = [1, 128], strides = [1, 1]} : vector<4x128xf32> to vector<1x128xf32>
    %9 = vector.broadcast %7 : vector<24x1xf32> to vector<24x128xf32>
    %10 = vector.broadcast %8 : vector<1x128xf32> to vector<24x128xf32>
    %11 = arith.mulf %9, %10 : vector<24x128xf32>
    %12 = arith.addf %6, %11 : vector<24x128xf32>
    %13 = vector.extract_strided_slice %1 {offsets = [0, 2], sizes = [24, 1], strides = [1, 1]} : vector<24x4xf32> to vector<24x1xf32>
    %14 = vector.extract_strided_slice %0 {offsets = [2, 0], sizes = [1, 128], strides = [1, 1]} : vector<4x128xf32> to vector<1x128xf32>
    %15 = vector.broadcast %13 : vector<24x1xf32> to vector<24x128xf32>
    %16 = vector.broadcast %14 : vector<1x128xf32> to vector<24x128xf32>
    %17 = arith.mulf %15, %16 : vector<24x128xf32>
    %18 = arith.addf %12, %17 : vector<24x128xf32>
    %19 = vector.extract_strided_slice %1 {offsets = [0, 3], sizes = [24, 1], strides = [1, 1]} : vector<24x4xf32> to vector<24x1xf32>
    %20 = vector.extract_strided_slice %0 {offsets = [3, 0], sizes = [1, 128], strides = [1, 1]} : vector<4x128xf32> to vector<1x128xf32>
    %21 = vector.broadcast %19 : vector<24x1xf32> to vector<24x128xf32>
    %22 = vector.broadcast %20 : vector<1x128xf32> to vector<24x128xf32>
    %23 = arith.mulf %21, %22 : vector<24x128xf32>
    %24 = arith.addf %18, %23 : vector<24x128xf32>
    %c0_3 = arith.constant 0 : index
    %c0_4 = arith.constant 0 : index
    %25 = vector.load %arg4[%c0_3, %c0_4] : memref<24x1xf32, #tpu.memory_space<vmem>>, vector<24x1xf32>
    %26 = vector.broadcast %25 : vector<24x1xf32> to vector<24x128xf32>
    %27 = arith.addf %24, %26 : vector<24x128xf32>
    %c0_5 = arith.constant 0 : index
    %c0_6 = arith.constant 0 : index
    %28 = vector.load %arg6[%c0_5, %c0_6] : memref<24x128xf32, #tpu.memory_space<vmem>>, vector<24x128xf32>
    tpu.vector_store %arg6[%c0_5, %c0_6], %27 {strides = array<i32>} : memref<24x128xf32, #tpu.memory_space<vmem>>, vector<24x128xf32>,
    %c0_7 = arith.constant 0 : index
    %c0_8 = arith.constant 0 : index
    %29 = vector.load %arg5[%c0_7, %c0_8] : memref<24x128xf32, #tpu.memory_space<vmem>>, vector<24x128xf32>
    %30 = arith.subf %27, %29 : vector<24x128xf32>
    %31 = arith.mulf %30, %30 : vector<24x128xf32>
    %c0_9 = arith.constant 0 : index
    %32 = memref.load %arg1[%c0_9] : memref<1xf32, #tpu.memory_space<smem>>
    %33 = vector.extract_strided_slice %31 {offsets = [0, 0], sizes = [8, 128], strides = [1, 1]} : vector<24x128xf32> to vector<8x128xf32>
    %34 = vector.shape_cast %33 : vector<8x128xf32> to vector<1x8x128xf32>
    %cst = arith.constant dense<0.000000e+00> : vector<1xf32>
    %35 = vector.multi_reduction <add>, %34, %cst [1, 2] : vector<1x8x128xf32> to vector<1xf32>
    %36 = vector.shape_cast %35 : vector<1xf32> to vector<1x1x1xf32>
    %37 = vector.extract %36[0, 0, 0] : f32 from vector<1x1x1xf32>
    %c0_10 = arith.constant 0 : index
    %38 = memref.load %arg0[%c0_10] : memref<3xf32, #tpu.memory_space<smem>>
    %39 = arith.mulf %38, %37 : f32
    %40 = arith.addf %32, %39 : f32
    %41 = vector.extract_strided_slice %31 {offsets = [8, 0], sizes = [8, 128], strides = [1, 1]} : vector<24x128xf32> to vector<8x128xf32>
    %42 = vector.shape_cast %41 : vector<8x128xf32> to vector<1x8x128xf32>
    %cst_11 = arith.constant dense<0.000000e+00> : vector<1xf32>
    %43 = vector.multi_reduction <add>, %42, %cst_11 [1, 2] : vector<1x8x128xf32> to vector<1xf32>
    %44 = vector.shape_cast %43 : vector<1xf32> to vector<1x1x1xf32>
    %45 = vector.extract %44[0, 0, 0] : f32 from vector<1x1x1xf32>
    %c1 = arith.constant 1 : index
    %46 = memref.load %arg0[%c1] : memref<3xf32, #tpu.memory_space<smem>>
    %47 = arith.mulf %46, %45 : f32
    %48 = arith.addf %40, %47 : f32
    %49 = vector.extract_strided_slice %31 {offsets = [16, 0], sizes = [8, 128], strides = [1, 1]} : vector<24x128xf32> to vector<8x128xf32>
    %50 = vector.shape_cast %49 : vector<8x128xf32> to vector<1x8x128xf32>
    %cst_12 = arith.constant dense<0.000000e+00> : vector<1xf32>
    %51 = vector.multi_reduction <add>, %50, %cst_12 [1, 2] : vector<1x8x128xf32> to vector<1xf32>
    %52 = vector.shape_cast %51 : vector<1xf32> to vector<1x1x1xf32>
    %53 = vector.extract %52[0, 0, 0] : f32 from vector<1x1x1xf32>
    %c2 = arith.constant 2 : index
    %54 = memref.load %arg0[%c2] : memref<3xf32, #tpu.memory_space<smem>>
    %55 = arith.mulf %54, %53 : f32
    %56 = arith.addf %48, %55 : f32
    %c0_13 = arith.constant 0 : index
    %c0_14 = arith.constant 0 : index
    %57 = memref.load %arg7[%c0_13, %c0_14] : memref<1x1xf32, #tpu.memory_space<smem>>
    memref.store %56, %arg7[%c0_13, %c0_14] : memref<1x1xf32, #tpu.memory_space<smem>>
    return
  }
}

</mosaic_0001>

<bundles_post_ra>
// kernel: multitask_forward.1
= control target key start
LH: loop header
LB: loop body
LE: loop exit
PB: predicated region body
PF: predicated region fallthrough
CT: control target
= control target key end

     0   :  { %14 = vsyncpa [#allocation5], 0  ;;  %s376_s0 = inlined_call_operand.vmem [shape: f32[3], index: 0, kind: input, shape index: {}]   ;;  %s377_s1 = inlined_call_operand.<no memory space> [shape: f32[1], index: 1, kind: input, shape index: {}]   ;;  %s378_s2 = inlined_call_operand.vmem [shape: f32[4,128], index: 2, kind: input, shape index: {}]   ;;  %s379_s3 = inlined_call_operand.vmem [shape: f32[24,4], index: 3, kind: input, shape index: {}]   ;;  %s380_s4 = inlined_call_operand.vmem [shape: f32[24,1], index: 4, kind: input, shape index: {}]   ;;  %s381_s5 = inlined_call_operand.vmem [shape: f32[24,128], index: 5, kind: input, shape index: {}]   ;;  %s382_s6 = inlined_call_operand.vmem [shape: f32[24,128], index: 6, kind: output, shape index: {0}]   ;;  %s383_s7 = inlined_call_operand.hbm [shape: f32[1,1], index: 7, kind: output, shape index: {1}]  }
   0x1   :  { %15 = vsyncpa [#allocation4], 0  ;;  %s22_s26 = sshll.u32 %s376_s0, 4  ;;  %s23_s26 = int_to_ptr.vmem [resolvable:$true] %s22_s26 }
   0x2   :  { %s247_s27 = scalar_lea.vmem %s23_s26, 16  ;;  %p252_p1 = scmp.lt.s32.totalorder %s23_s26, %s23_s26 }
   0x3   :  { %p248_p0 = scmp.ne.s32.totalorder %s23_s26, %s247_s27  ;;  %p253_p2 = scmp.lt.s32.totalorder %s247_s27, %s247_s27 }
   0x5   :  { %p254_p3 = por %p253_p2, %p252_p1 }
   0x7   :  { %p255_p4 = pnand %p254_p3, %p248_p0 }
   0x9   :  { %258 = shalt.err (!%p255_p4)
}
   0xa   :  { %s273_s28 = smov [#allocation3]  }
   0xb   :  { %25 = dma.vmem_to_smem %s23_s26, 16, %s273_s28, [#allocation5]  }
   0xc   :  { %269 = dma.done.wait [#allocation5], 16  }
   0xd   :  { %270 = vsyncadd [#allocation5], 4294967280 }
   0xe   :  { %39 = sfence }
   0xf   :  { %v42_v0 = vld [vmem:[%s379_s3 + $0x8] sm:$0xff]  ;;  %v41_v1 = vld [vmem:[%s379_s3] sm:$0xff]  ;;  %v274_v2 = vmov 1   ;;  %v275_v3 = vmov 0   ;;  %v43_v4 = vld [vmem:[%s379_s3 + $0x10] sm:$0xff]  ;;  %v276_v5 = vmov 2   ;;  %v59_v13 = vlaneseq }
  0x10   :  { %236 = vset.pattern.permute.xlu0 %v274_v2  ;;  %238 = vset.pattern.permute.xlu1 %v275_v3  ;;  %v277_v6 = vmov 3   ;;  %v133_v7 = vld [vmem:[%s380_s4 + $0x8] sm:$0xff]  ;;  %v132_v8 = vld [vmem:[%s380_s4] sm:$0xff]  ;;  %v134_v9 = vld [vmem:[%s380_s4 + $0x10] sm:$0xff]  ;;  %s223_s28 = sld [smem:[#allocation3 + $0x2]]  ;;  %s259_s17 = scalar_lea.hbm %s383_s7, 16 }
  0x11   :  { %51 = vperm.xlu1 %238, %v42_v0   ;;  %67 = vperm.xlu0 %236, %v41_v1   ;;  %v60_v16 = vshrl.u32 %v59_v13, 7  ;;  %v40_v21 = vld [vmem:[%s378_s2] sm:$0xf]  ;;  %v157_v54 = vld [vmem:[%s381_s5 + $0x8] sm:$0xff]  ;;  %p260_p5 = scmp.ne.s32.totalorder %s383_s7, %s259_s17  ;;  %p263_p6 = scmp.lt.u32.totalorder %s259_s17, %s383_s7 }
  0x12   :  { %v156_v57 = vld [vmem:[%s381_s5] sm:$0xff] }
  0x13   :  { %v80_v18 = vsub.s32 1, %v60_v16  ;;  %v61_v19 = vsub.s32 0, %v60_v16  ;;  %v102_v22 = vsub.s32 2, %v60_v16  ;;  %v124_v26 = vsub.s32 3, %v60_v16  ;;  %p265_p7 = pnand %p263_p6, %p260_p5 }
  0x15   :  { %239 = vset.pattern.permute.xlu1 %v274_v2  ;;  %237 = vset.pattern.permute.xlu0 %v275_v3  ;;  %v81_v23 = vrot.slane %v40_v21, %v80_v18  ;;  %v62_v25 = vrot.slane %v40_v21, %v61_v19  ;;  %v103_v29 = vrot.slane %v40_v21, %v102_v22 }
  0x16   :  { %71 = vperm.xlu1 %239, %v42_v0   ;;  %46 = vperm.xlu0 %237, %v41_v1   ;;  %v125_v33 = vrot.slane %v40_v21, %v124_v26 }
  0x1a   :  { %240 = vset.pattern.permute.xlu1 %v276_v5  ;;  %56 = vperm.xlu0 %237, %v43_v4  }
  0x1b   :  { %89 = vperm.xlu1 %240, %v41_v1  }
  0x1e   :  { %243 = vset.pattern.permute.xlu0 %v277_v6 }
  0x1f   :  { %241 = vset.pattern.permute.xlu1 %v274_v2  ;;  %111 = vperm.xlu0 %243, %v41_v1  }
  0x20   :  { %75 = vperm.xlu1 %241, %v43_v4  }
  0x23   :  { %119 = vperm.xlu0 %243, %v43_v4  }
  0x24   :  { %242 = vset.pattern.permute.xlu1 %v276_v5 }
  0x25   :  { %93 = vperm.xlu1 %242, %v42_v0  }
  0x27   :  { %246 = vset.pattern.permute.xlu0 %v275_v3 }
  0x28   :  { %142 = vperm.xlu0 %246, %v133_v7  }
  0x29   :  { %97 = vperm.xlu1 %242, %v43_v4  }
  0x2d   :  { %244 = vset.pattern.permute.xlu1 %v277_v6 }
  0x2e   :  { %115 = vperm.xlu1 %244, %v42_v0   ;;  %v158_v0 = vld [vmem:[%s381_s5 + $0x10] sm:$0xff]  ;;  %s175_s5 = sld [smem:[#allocation3]] }
  0x32   :  { %245 = vset.pattern.permute.xlu1 %v275_v3 }
  0x33   :  { %137 = vperm.xlu1 %245, %v132_v8  }
  0x37   :  { %147 = vperm.xlu1 %245, %v134_v9  }
  0x90   :  { %v52_v10 = vpop.permute.xlu1 %51  ;;  %v68_v11 = vpop.permute.xlu0 %67 }
  0x91   :  { %v82_v27 = vmul.f32 %v81_v23, %v68_v11  ;;  %v64_v34 = vmul.f32 %v62_v25, %v52_v10 }
  0x95   :  { %v72_v12 = vpop.permute.xlu1 %71  ;;  %v47_v15 = vpop.permute.xlu0 %46 }
  0x96   :  { %v63_v28 = vmul.f32 %v62_v25, %v47_v15  ;;  %v83_v31 = vmul.f32 %v81_v23, %v72_v12 }
  0x98   :  { %v85_v36 = vadd.f32 %v82_v27, %v63_v28  ;;  %v86_v41 = vadd.f32 %v83_v31, %v64_v34 }
  0x99   :  { %v57_v20 = vpop.permute.xlu0 %56 }
  0x9a   :  { %v90_v14 = vpop.permute.xlu1 %89  ;;  %v65_v38 = vmul.f32 %v62_v25, %v57_v20 }
  0x9b   :  { %v104_v37 = vmul.f32 %v103_v29, %v90_v14 }
  0x9d   :  { %v107_v47 = vadd.f32 %v104_v37, %v85_v36 }
  0x9e   :  { %v112_v30 = vpop.permute.xlu0 %111 }
  0x9f   :  { %v76_v17 = vpop.permute.xlu1 %75  ;;  %v126_v42 = vmul.f32 %v125_v33, %v112_v30 }
  0xa0   :  { %v84_v39 = vmul.f32 %v81_v23, %v76_v17 }
  0xa1   :  { %v129_v53 = vadd.f32 %v126_v42, %v107_v47 }
  0xa2   :  { %v120_v40 = vpop.permute.xlu0 %119  ;;  %v87_v48 = vadd.f32 %v84_v39, %v65_v38 }
  0xa3   :  { %v128_v52 = vmul.f32 %v125_v33, %v120_v40 }
  0xa4   :  { %v94_v24 = vpop.permute.xlu1 %93 }
  0xa5   :  { %v105_v35 = vmul.f32 %v103_v29, %v94_v24 }
  0xa7   :  { %v108_v45 = vadd.f32 %v105_v35, %v86_v41  ;;  %v143_v49 = vpop.permute.xlu0 %142 }
  0xa8   :  { %v98_v32 = vpop.permute.xlu1 %97 }
  0xa9   :  { %v106_v43 = vmul.f32 %v103_v29, %v98_v32 }
  0xab   :  { %v109_v51 = vadd.f32 %v106_v43, %v87_v48 }
  0xad   :  { %v116_v44 = vpop.permute.xlu1 %115  ;;  %v131_v60 = vadd.f32 %v128_v52, %v109_v51 }
  0xae   :  { %v127_v46 = vmul.f32 %v125_v33, %v116_v44 }
  0xb0   :  { %v130_v50 = vadd.f32 %v127_v46, %v108_v45 }
  0xb2   :  { %v151_v55 = vadd.f32 %v143_v49, %v130_v50  ;;  %v138_v56 = vpop.permute.xlu1 %137 }
  0xb3   :  { %v150_v58 = vadd.f32 %v138_v56, %v129_v53 }
  0xb4   :  { %154 = vst [vmem:[%s382_s6 + $0x8] sm:$0xff] %v151_v55  ;;  %v160_v59 = vsub.f32 %v151_v55, %v157_v54 }
  0xb5   :  { %153 = vst [vmem:[%s382_s6] sm:$0xff] %v150_v58  ;;  %v159_v61 = vsub.f32 %v150_v58, %v156_v57 }
  0xb6   :  { %v148_v62 = vpop.permute.xlu1 %147  ;;  %v163_v63 = vmul.f32 %v160_v59, %v160_v59 }
  0xb7   :  { %v152_v1 = vadd.f32 %v148_v62, %v131_v60  ;;  %v162_v2 = vmul.f32 %v159_v61, %v159_v61 }
  0xb8   :  { %178 = vadd.xlane.f32.xlu0 %v163_v63 }
  0xb9   :  { %155 = vst [vmem:[%s382_s6 + $0x10] sm:$0xff] %v152_v1  ;;  %166 = vadd.xlane.f32.xlu1 %v162_v2  ;;  %v161_v3 = vsub.f32 %v152_v1, %v158_v0  ;;  %s222_s6 = sld [smem:[#allocation3 + $0x1]] }
  0xbb   :  { %v164_v4 = vmul.f32 %v161_v3, %v161_v3 }
  0xbd   :  { %190 = vadd.xlane.f32.xlu0 %v164_v4 }
 0x145   :  { %v179_v5 = vpop.xlane.xlu0 %178 }
 0x146   :  { %v180_v6 = vrot.slane %v179_v5, 4  ;;  %v167_v7 = vpop.xlane.xlu1 %166 }
 0x147   :  { %v168_v8 = vrot.slane %v167_v7, 4 }
 0x148   :  { %v181_v9 = vadd.f32 %v180_v6, %v179_v5 }
 0x149   :  { %v169_v10 = vadd.f32 %v168_v8, %v167_v7 }
 0x14a   :  { %v182_v11 = vrot.slane %v181_v9, 2  ;;  %v191_v12 = vpop.xlane.xlu0 %190 }
 0x14b   :  { %v170_v13 = vrot.slane %v169_v10, 2  ;;  %v192_v14 = vrot.slane %v191_v12, 4 }
 0x14c   :  { %v183_v15 = vadd.f32 %v182_v11, %v181_v9 }
 0x14d   :  { %v193_v16 = vadd.f32 %v192_v14, %v191_v12  ;;  %v171_v17 = vadd.f32 %v170_v13, %v169_v10 }
 0x14e   :  { %v184_v18 = vrot.slane %v183_v15, 1 }
 0x14f   :  { %v194_v19 = vrot.slane %v193_v16, 2  ;;  %v172_v20 = vrot.slane %v171_v17, 1 }
 0x150   :  { %v185_v21 = vadd.f32 %v184_v18, %v183_v15 }
 0x151   :  { %v195_v22 = vadd.f32 %v194_v19, %v193_v16  ;;  %v173_v23 = vadd.f32 %v172_v20, %v171_v17 }
 0x153   :  { %224 = vpush %v173_v23  ;;  %v196_v24 = vrot.slane %v195_v22, 1 }
 0x154   :  { %226 = vpush %v185_v21 }
 0x155   :  { %v197_v25 = vadd.f32 %v196_v24, %v195_v22 }
 0x157   :  { %228 = vpush %v197_v25 }
 0x184   :  { %s225_s29 = spop %224 }
 0x185   :  { %s176_s30 = smul.f32 %s225_s29, %s175_s5  ;;  %s227_s8 = spop %226 }
 0x186   :  { %s188_s11 = smul.f32 %s227_s8, %s222_s6 }
 0x187   :  { %s177_s10 = sadd.f32 %s176_s30, %s377_s1 }
 0x188   :  { %s229_s12 = spop %228 }
 0x189   :  { %s189_s3 = sadd.f32 %s188_s11, %s177_s10  ;;  %s200_s13 = smul.f32 %s229_s12, %s223_s28 }
 0x18b   :  { %s201_s14 = sadd.f32 %s200_s13, %s189_s3 }
 0x18d   :  { %203 = sst [smem:[#allocation6]] %s201_s14 }
 0x18e   :  { %268 = shalt.err (!%p265_p7)
}
 0x18f   :  { %s278_s1 = smov [#allocation6]  }
 0x190   :  { %213 = dma.smem_to_hbm %s278_s1, 16, %s383_s7, [#allocation4]  }
 0x191   :  { %271 = dma.done.wait [#allocation4], 16  }
 0x192   :  { %272 = vsyncadd [#allocation4], 4294967280 }
 0x193   :  { %219 = sfence }
 0x194   :  { %220 = vsyncpa [#allocation4], 1 }
 0x195   :  { %221 = vsyncpa [#allocation5], 1 }

</bundles_post_ra>
